<compile_context>
chip_gen: v6e
topology: v6e:2x2x1
jax: 0.10.0
libtpu: 0.0.40
codegen_flags: <defaults>
</compile_context>

<pallas_src>
import jax
import jax.numpy as jnp
from jax.experimental import pallas as pl
from jax.experimental.pallas import tpu as pltpu

_LANE = 128  # TPU vreg lane width


def _round_up(v, m):
    return ((v + m - 1) // m) * m


def _mlp_kernel(w_ref, b_ref, x_ref, o_ref):
    # w_ref: (K, N) f32 SMEM   b_ref: (N,) f32 SMEM
    # x_ref: (K, tm) f32 VMEM  o_ref: (N, tm) f32 VMEM
    K = x_ref.shape[0]
    N = o_ref.shape[0]
    x = x_ref[...]                                   # (K, tm), lane-dense
    for n in range(N):                               # static: N == 3
        acc = x[0:1, :] * w_ref[0, n]                # scalar-broadcast VPU FMA
        for k in range(1, K):                        # static: K == 3
            acc = acc + x[k:k + 1, :] * w_ref[k, n]
        acc = acc + b_ref[n]
        o_ref[n:n + 1, :] = jnp.maximum(acc, 0.0)    # lane-dense store


def mlp_forward_t(x_t, w0, b, *, tm_max=32768):
    """Native-layout entry point.

    x_t: (K, M) f32, w0: (K, N) f32, b: (N,) f32 -> relu(w0^T @ x_t + b): (N, M) f32.
    """
    K, M = x_t.shape
    Kw, N = w0.shape
    assert K == Kw and b.shape == (N,)

    # Lane-axis tile: multiple of 128; capped so (a) VMEM stays tiny and
    # (b) the grid has >= 2 steps when M allows (v7x megacore split).
    tm = min(int(tm_max), max(_LANE, _round_up(pl.cdiv(M, 2), _LANE)))
    grid = (pl.cdiv(M, tm),)

    cost = pl.CostEstimate(
        flops=2 * M * K * N + 2 * M * N,
        transcendentals=0,
        bytes_accessed=4 * (M * K + K * N + N + M * N),
    )

    return pl.pallas_call(
        _mlp_kernel,
        out_shape=jax.ShapeDtypeStruct((N, M), jnp.float32),
        grid=grid,
        in_specs=[
            pl.BlockSpec(memory_space=pltpu.MemorySpace.SMEM),  # w0 (K, N), resident
            pl.BlockSpec(memory_space=pltpu.MemorySpace.SMEM),  # b  (N,),  resident
            pl.BlockSpec((K, tm), lambda i: (0, i)),            # x_T column tile
        ],
        out_specs=pl.BlockSpec((N, tm), lambda i: (0, i)),      # out_T column tile
        compiler_params=pltpu.CompilerParams(
            dimension_semantics=("parallel",),  # v7x: split M tiles across the 2 TCs
        ),
        cost_estimate=cost,
    )(w0, b, x_t)


def mlp_forward(x, w0, b, *, tm_max=32768):
    """Module-layout convenience: x: (M, K) -> relu(x @ w0 + b): (M, N).

    The two boundary transposes are ordinary XLA ops (12 B/row each);
    consumers that can stay feature-major should use mlp_forward_t directly.
    """
    out_t = mlp_forward_t(x.T, w0, b, tm_max=tm_max)
    return out_t.T


if __name__ == "__main__":
    key = jax.random.PRNGKey(0)
    kx, kw, kb, kx2 = jax.random.split(key, 4)

    # Module defines w0: (3, 3), b: (3,). Random values (instead of the
    # module's torch.zeros init) so the bias add and ReLU are exercised.
    M, K, N = 8, 3, 3
    x = jax.random.normal(kx, (M, K), dtype=jnp.float32)
    w0 = jax.random.normal(kw, (K, N), dtype=jnp.float32)
    b = jax.random.normal(kb, (N,), dtype=jnp.float32)

    out = mlp_forward(x, w0, b)
    jax.block_until_ready(out)
    ref = jnp.maximum(x @ w0 + b, 0.0)
    assert out.shape == (M, N)
    assert jnp.allclose(out, ref, atol=1e-5, rtol=1e-5)

    # Larger M, not a multiple of the tile: exercises the multi-step grid and
    # the partial (masked) last block, using the kernel's native layout
    # directly (no boundary transposes, no trailing slice).
    M2 = 520
    x2 = jax.random.normal(kx2, (M2, K), dtype=jnp.float32)
    out2_t = mlp_forward_t(x2.T, w0, b)
    jax.block_until_ready(out2_t)
    ref2 = jnp.maximum(x2 @ w0 + b, 0.0)
    assert out2_t.shape == (N, M2)
    assert jnp.allclose(out2_t.T, ref2, atol=1e-5, rtol=1e-5)

    print("KERNEL_OK")
</pallas_src>

<mosaic_0001>
module attributes {stable_mosaic.version = 11 : i64} {
  func.func @_mlp_kernel(%arg0: i32, %arg1: memref<3x3xf32, #tpu.memory_space<smem>>, %arg2: memref<3xf32, #tpu.memory_space<smem>>, %arg3: memref<3x128xf32, #tpu.memory_space<vmem>>, %arg4: memref<3x128xf32, #tpu.memory_space<vmem>>) attributes {dimension_semantics = [#tpu.dimension_semantics<parallel>], iteration_bounds = array<i64: 1>, scalar_prefetch = 0 : i64, scratch_operands = 0 : i64, tpu.core_type = #tpu.core_type<tc>, window_params = [{transform_indices = @transform_0, window_bounds = array<i64: 3, 3>}, {transform_indices = @transform_1, window_bounds = array<i64: 3>}, {transform_indices = @transform_2, window_bounds = array<i64: 3, 128>}, {transform_indices = @transform_3, window_bounds = array<i64: 3, 128>}]} {
    %c0 = arith.constant 0 : index
    %c0_0 = arith.constant 0 : index
    %0 = vector.load %arg3[%c0, %c0_0] : memref<3x128xf32, #tpu.memory_space<vmem>>, vector<3x128xf32>
    %1 = vector.extract_strided_slice %0 {offsets = [0, 0], sizes = [1, 128], strides = [1, 1]} : vector<3x128xf32> to vector<1x128xf32>
    %c0_1 = arith.constant 0 : index
    %c0_2 = arith.constant 0 : index
    %2 = memref.load %arg1[%c0_1, %c0_2] : memref<3x3xf32, #tpu.memory_space<smem>>
    %3 = vector.broadcast %2 : f32 to vector<1x128xf32>
    %4 = arith.mulf %1, %3 : vector<1x128xf32>
    %5 = vector.extract_strided_slice %0 {offsets = [1, 0], sizes = [1, 128], strides = [1, 1]} : vector<3x128xf32> to vector<1x128xf32>
    %c1 = arith.constant 1 : index
    %c0_3 = arith.constant 0 : index
    %6 = memref.load %arg1[%c1, %c0_3] : memref<3x3xf32, #tpu.memory_space<smem>>
    %7 = vector.broadcast %6 : f32 to vector<1x128xf32>
    %8 = arith.mulf %5, %7 : vector<1x128xf32>
    %9 = arith.addf %4, %8 : vector<1x128xf32>
    %10 = vector.extract_strided_slice %0 {offsets = [2, 0], sizes = [1, 128], strides = [1, 1]} : vector<3x128xf32> to vector<1x128xf32>
    %c2 = arith.constant 2 : index
    %c0_4 = arith.constant 0 : index
    %11 = memref.load %arg1[%c2, %c0_4] : memref<3x3xf32, #tpu.memory_space<smem>>
    %12 = vector.broadcast %11 : f32 to vector<1x128xf32>
    %13 = arith.mulf %10, %12 : vector<1x128xf32>
    %14 = arith.addf %9, %13 : vector<1x128xf32>
    %c0_5 = arith.constant 0 : index
    %15 = memref.load %arg2[%c0_5] : memref<3xf32, #tpu.memory_space<smem>>
    %16 = vector.broadcast %15 : f32 to vector<1x128xf32>
    %17 = arith.addf %14, %16 : vector<1x128xf32>
    %cst = arith.constant 0.000000e+00 : f32
    %18 = vector.broadcast %cst : f32 to vector<1x128xf32>
    %19 = arith.maximumf %17, %18 : vector<1x128xf32>
    %c0_6 = arith.constant 0 : index
    %c0_7 = arith.constant 0 : index
    %20 = vector.load %arg4[%c0_6, %c0_7] : memref<3x128xf32, #tpu.memory_space<vmem>>, vector<1x128xf32>
    tpu.vector_store %arg4[%c0_6, %c0_7], %19 {strides = array<i32>} : memref<3x128xf32, #tpu.memory_space<vmem>>, vector<1x128xf32>,
    %21 = vector.extract_strided_slice %0 {offsets = [0, 0], sizes = [1, 128], strides = [1, 1]} : vector<3x128xf32> to vector<1x128xf32>
    %c0_8 = arith.constant 0 : index
    %c1_9 = arith.constant 1 : index
    %22 = memref.load %arg1[%c0_8, %c1_9] : memref<3x3xf32, #tpu.memory_space<smem>>
    %23 = vector.broadcast %22 : f32 to vector<1x128xf32>
    %24 = arith.mulf %21, %23 : vector<1x128xf32>
    %25 = vector.extract_strided_slice %0 {offsets = [1, 0], sizes = [1, 128], strides = [1, 1]} : vector<3x128xf32> to vector<1x128xf32>
    %c1_10 = arith.constant 1 : index
    %c1_11 = arith.constant 1 : index
    %26 = memref.load %arg1[%c1_10, %c1_11] : memref<3x3xf32, #tpu.memory_space<smem>>
    %27 = vector.broadcast %26 : f32 to vector<1x128xf32>
    %28 = arith.mulf %25, %27 : vector<1x128xf32>
    %29 = arith.addf %24, %28 : vector<1x128xf32>
    %30 = vector.extract_strided_slice %0 {offsets = [2, 0], sizes = [1, 128], strides = [1, 1]} : vector<3x128xf32> to vector<1x128xf32>
    %c2_12 = arith.constant 2 : index
    %c1_13 = arith.constant 1 : index
    %31 = memref.load %arg1[%c2_12, %c1_13] : memref<3x3xf32, #tpu.memory_space<smem>>
    %32 = vector.broadcast %31 : f32 to vector<1x128xf32>
    %33 = arith.mulf %30, %32 : vector<1x128xf32>
    %34 = arith.addf %29, %33 : vector<1x128xf32>
    %c1_14 = arith.constant 1 : index
    %35 = memref.load %arg2[%c1_14] : memref<3xf32, #tpu.memory_space<smem>>
    %36 = vector.broadcast %35 : f32 to vector<1x128xf32>
    %37 = arith.addf %34, %36 : vector<1x128xf32>
    %cst_15 = arith.constant 0.000000e+00 : f32
    %38 = vector.broadcast %cst_15 : f32 to vector<1x128xf32>
    %39 = arith.maximumf %37, %38 : vector<1x128xf32>
    %c1_16 = arith.constant 1 : index
    %c0_17 = arith.constant 0 : index
    %40 = vector.load %arg4[%c1_16, %c0_17] : memref<3x128xf32, #tpu.memory_space<vmem>>, vector<1x128xf32>
    tpu.vector_store %arg4[%c1_16, %c0_17], %39 {strides = array<i32>} : memref<3x128xf32, #tpu.memory_space<vmem>>, vector<1x128xf32>,
    %41 = vector.extract_strided_slice %0 {offsets = [0, 0], sizes = [1, 128], strides = [1, 1]} : vector<3x128xf32> to vector<1x128xf32>
    %c0_18 = arith.constant 0 : index
    %c2_19 = arith.constant 2 : index
    %42 = memref.load %arg1[%c0_18, %c2_19] : memref<3x3xf32, #tpu.memory_space<smem>>
    %43 = vector.broadcast %42 : f32 to vector<1x128xf32>
    %44 = arith.mulf %41, %43 : vector<1x128xf32>
    %45 = vector.extract_strided_slice %0 {offsets = [1, 0], sizes = [1, 128], strides = [1, 1]} : vector<3x128xf32> to vector<1x128xf32>
    %c1_20 = arith.constant 1 : index
    %c2_21 = arith.constant 2 : index
    %46 = memref.load %arg1[%c1_20, %c2_21] : memref<3x3xf32, #tpu.memory_space<smem>>
    %47 = vector.broadcast %46 : f32 to vector<1x128xf32>
    %48 = arith.mulf %45, %47 : vector<1x128xf32>
    %49 = arith.addf %44, %48 : vector<1x128xf32>
    %50 = vector.extract_strided_slice %0 {offsets = [2, 0], sizes = [1, 128], strides = [1, 1]} : vector<3x128xf32> to vector<1x128xf32>
    %c2_22 = arith.constant 2 : index
    %c2_23 = arith.constant 2 : index
    %51 = memref.load %arg1[%c2_22, %c2_23] : memref<3x3xf32, #tpu.memory_space<smem>>
    %52 = vector.broadcast %51 : f32 to vector<1x128xf32>
    %53 = arith.mulf %50, %52 : vector<1x128xf32>
    %54 = arith.addf %49, %53 : vector<1x128xf32>
    %c2_24 = arith.constant 2 : index
    %55 = memref.load %arg2[%c2_24] : memref<3xf32, #tpu.memory_space<smem>>
    %56 = vector.broadcast %55 : f32 to vector<1x128xf32>
    %57 = arith.addf %54, %56 : vector<1x128xf32>
    %cst_25 = arith.constant 0.000000e+00 : f32
    %58 = vector.broadcast %cst_25 : f32 to vector<1x128xf32>
    %59 = arith.maximumf %57, %58 : vector<1x128xf32>
    %c2_26 = arith.constant 2 : index
    %c0_27 = arith.constant 0 : index
    %60 = vector.load %arg4[%c2_26, %c0_27] : memref<3x128xf32, #tpu.memory_space<vmem>>, vector<1x128xf32>
    tpu.vector_store %arg4[%c2_26, %c0_27], %59 {strides = array<i32>} : memref<3x128xf32, #tpu.memory_space<vmem>>, vector<1x128xf32>,
    return
  }
  func.func @transform_0(%arg0: i32) -> (i32, i32) {
    %c0_i32 = arith.constant 0 : i32
    %c0_i32_0 = arith.constant 0 : i32
    %c0_i32_1 = arith.constant 0 : i32
    return %c0_i32, %c0_i32_0 : i32, i32
  }
  func.func @transform_1(%arg0: i32) -> i32 {
    %c0_i32 = arith.constant 0 : i32
    %c0_i32_0 = arith.constant 0 : i32
    return %c0_i32 : i32
  }
  func.func @transform_2(%arg0: i32) -> (i32, i32) {
    %c0_i32 = arith.constant 0 : i32
    %c0_i32_0 = arith.constant 0 : i32
    return %c0_i32, %arg0 : i32, i32
  }
  func.func @transform_3(%arg0: i32) -> (i32, i32) {
    %c0_i32 = arith.constant 0 : i32
    %c0_i32_0 = arith.constant 0 : i32
    return %c0_i32, %arg0 : i32, i32
  }
}

</mosaic_0001>

<bundles_post_ra>
// kernel: tpu_custom_call.1
= control target key start
LH: loop header
LB: loop body
LE: loop exit
PB: predicated region body
PF: predicated region fallthrough
CT: control target
= control target key end

     0   :  { %8 = vsyncpa [#allocation5], 0  ;;  %s258_s0 = inlined_call_operand.hbm [shape: f32[3,3], index: 0, kind: input, shape index: {}]   ;;  %s259_s1 = inlined_call_operand.vmem [shape: f32[3], index: 1, kind: input, shape index: {}]   ;;  %s260_s2 = inlined_call_operand.hbm [shape: f32[3,8], index: 2, kind: input, shape index: {}]   ;;  %s261_s3 = inlined_call_operand.hbm [shape: f32[3,8], index: 3, kind: output, shape index: {}]  }
   0x1   :  { %9 = vsyncpa [#allocation6], 0 }
   0x2   :  { %10 = vsyncpa [#allocation3], 0 }
   0x3   :  { %11 = vsyncpa [#allocation4], 0  ;;  %s26_s14 = sshll.u32 %s259_s1, 4  ;;  %s216_s15 = smov [#allocation2]   ;;  %s27_s14 = int_to_ptr.vmem [resolvable:$true] %s26_s14 }
   0x4   :  { %19 = dma.hbm_to_smem %s258_s0, 64, %s216_s15, [#allocation5]  }
   0x5   :  { %s156_s18 = scalar_lea.vmem %s27_s14, 16  ;;  %p161_p1 = scmp.lt.s32.totalorder %s27_s14, %s27_s14 }
   0x6   :  { %p157_p0 = scmp.ne.s32.totalorder %s27_s14, %s156_s18  ;;  %p162_p2 = scmp.lt.s32.totalorder %s156_s18, %s156_s18 }
   0x8   :  { %p163_p3 = por %p162_p2, %p161_p1 }
   0xa   :  { %p164_p4 = pnand %p163_p3, %p157_p0 }
   0xc   :  { %167 = shalt.err (!%p164_p4)
}
   0xd   :  { %s217_s19 = smov [#allocation7]   ;;  %s218_s20 = smov [#allocation8]  }
   0xe   :  { %29 = dma.vmem_to_smem %s27_s14, 16, %s217_s19, [#allocation6]  }
   0xf   :  { %s36_s21 = sshll.u32 %s218_s20, 4  ;;  %s37_s21 = int_to_ptr.vmem [resolvable:$true] %s36_s21 }
  0x10   :  { %s176_s22 = scalar_lea.vmem %s37_s21, 64  ;;  %p181_p6 = scmp.lt.s32.totalorder %s37_s21, %s37_s21 }
  0x11   :  { %p177_p5 = scmp.ne.s32.totalorder %s37_s21, %s176_s22  ;;  %p182_p7 = scmp.lt.s32.totalorder %s176_s22, %s176_s22 }
  0x13   :  { %p183_p8 = por %p182_p7, %p181_p6 }
  0x15   :  { %p184_p9 = pnand %p183_p8, %p177_p5 }
  0x17   :  { %187 = shalt.err (!%p184_p9)
}
  0x18   :  { %39 = dma.hbm_to_vmem [thread:$0]  %s260_s2, 64, %s37_s21, [#allocation3]  }
  0x19   :  { %208 = dma.done.wait [#allocation5], 64  }
  0x1a   :  { %209 = vsyncadd [#allocation5], 4294967232 }
  0x1b   :  { %210 = dma.done.wait [#allocation6], 16  }
  0x1c   :  { %211 = vsyncadd [#allocation6], 4294967280 }
  0x1d   :  { %212 = dma.done.wait [#allocation3], 64  }
  0x1e   :  { %213 = vsyncadd [#allocation3], 4294967232 }
  0x1f   :  { %49 = sfence }
  0x20   :  { %s51_s23 = sld [smem:[#allocation2]]  ;;  %v50_v0 = vld [vmem:[#allocation8] sm:$0x7]  ;;  %s219_s7 = smov [#allocation9]  }
  0x21   :  { %s134_s24 = sld [smem:[#allocation2 + $0x80]]  ;;  %s123_s8 = sshll.u32 %s219_s7, 4  ;;  %s124_s8 = int_to_ptr.vmem [resolvable:$true] %s123_s8 }
  0x22   :  { %s135_s25 = sld [smem:[#allocation2 + $0x100]]  ;;  %s188_s9 = scalar_lea.vmem %s124_s8, 64 }
  0x23   :  { %s249_s26 = sld [smem:[#allocation7]]  ;;  %p189_p10 = scmp.ne.s32.totalorder %s124_s8, %s188_s9 }
  0x24   :  { %s136_s27 = sld [smem:[#allocation2 + $0x1]]  ;;  %p193_p11 = scmp.lt.s32.totalorder %s124_s8, %s124_s8 }
  0x25   :  { %s137_s28 = sld [smem:[#allocation2 + $0x81]]  ;;  %p194_p12 = scmp.lt.s32.totalorder %s188_s9, %s188_s9 }
  0x26   :  { %v52_v1 = vstv %s51_s23  ;;  %s138_s29 = sld [smem:[#allocation2 + $0x101]] }
  0x27   :  { %v55_v2 = vstv %s134_s24  ;;  %s251_s30 = sld [smem:[#allocation7 + $0x1]]  ;;  %v53_v3 = vmul.f32 %v52_v1, %v50_v0  ;;  %p195_p13 = por %p194_p12, %p193_p11 }
  0x28   :  { %v56_v4 = vmul.f32 %v55_v2, %v50_v0  ;;  %v62_v5 = vstv %s135_s25  ;;  %s140_s2 = sld [smem:[#allocation2 + $0x2]] }
  0x29   :  { %v63_v6 = vmul.f32 %v62_v5, %v50_v0  ;;  %s141_s4 = sld [smem:[#allocation2 + $0x82]]  ;;  %v69_v15 = vstv %s249_s26  ;;  %p196_p0 = pnand %p195_p13, %p189_p10 }
  0x2a   :  { %v58_v7 = vrot.slane %v56_v4, 1  ;;  %v74_v8 = vstv %s136_s27  ;;  %s142_s5 = sld [smem:[#allocation2 + $0x102]] }
  0x2b   :  { %v65_v9 = vrot.slane %v63_v6, 2  ;;  %v77_v10 = vstv %s137_s28  ;;  %v75_v12 = vmul.f32 %v74_v8, %v50_v0  ;;  %s143_s6 = sld [smem:[#allocation7 + $0x2]] }
  0x2c   :  { %v60_v11 = vadd.f32 %v58_v7, %v53_v3  ;;  %v78_v13 = vmul.f32 %v77_v10, %v50_v0  ;;  %v84_v14 = vstv %s138_s29 }
  0x2d   :  { %v85_v16 = vmul.f32 %v84_v14, %v50_v0  ;;  %v91_v27 = vstv %s251_s30 }
  0x2e   :  { %v67_v17 = vadd.f32 %v65_v9, %v60_v11  ;;  %v80_v18 = vrot.slane %v78_v13, 1  ;;  %v96_v19 = vstv %s140_s2 }
  0x2f   :  { %v87_v20 = vrot.slane %v85_v16, 2  ;;  %v97_v21 = vmul.f32 %v96_v19, %v50_v0  ;;  %v99_v22 = vstv %s141_s4 }
  0x30   :  { %v70_v23 = vadd.f32 %v69_v15, %v67_v17  ;;  %v82_v24 = vadd.f32 %v80_v18, %v75_v12  ;;  %v100_v25 = vmul.f32 %v99_v22, %v50_v0  ;;  %v106_v26 = vstv %s142_s5 }
  0x31   :  { %v107_v28 = vmul.f32 %v106_v26, %v50_v0  ;;  %v113_v35 = vstv %s143_s6 }
  0x32   :  { %v71_v29 = vmax.f32 %v70_v23, 0.0  ;;  %v89_v30 = vadd.f32 %v87_v20, %v82_v24  ;;  %v102_v31 = vrot.slane %v100_v25, 1 }
  0x33   :  { %v109_v32 = vrot.slane %v107_v28, 2 }
  0x34   :  { %72 = vst [vmem:[#allocation9] sm:$0x1] %v71_v29  ;;  %v92_v33 = vadd.f32 %v91_v27, %v89_v30  ;;  %v104_v34 = vadd.f32 %v102_v31, %v97_v21 }
  0x36   :  { %v93_v36 = vmax.f32 %v92_v33, 0.0  ;;  %v111_v37 = vadd.f32 %v109_v32, %v104_v34 }
  0x38   :  { %94 = vst [vmem:[#allocation9 + $0x1] sm:$0x1] %v93_v36  ;;  %v114_v38 = vadd.f32 %v113_v35, %v111_v37 }
  0x3a   :  { %v115_v39 = vmax.f32 %v114_v38, 0.0 }
  0x3c   :  { %116 = vst [vmem:[#allocation9 + $0x2] sm:$0x1] %v115_v39 }
  0x3d   :  { %199 = shalt.err (!%p196_p0)
}
  0x3e   :  { %126 = dma.vmem_to_hbm [thread:$0]  %s124_s8, 64, %s261_s3, [#allocation4]  }
  0x3f   :  { %214 = dma.done.wait [#allocation4], 64  }
  0x40   :  { %215 = vsyncadd [#allocation4], 4294967232 }
  0x41   :  { %130 = vsyncpa [#allocation3], 1 }
  0x42   :  { %131 = vsyncpa [#allocation4], 1 }
  0x43   :  { %132 = vsyncpa [#allocation5], 1 }
  0x44   :  { %133 = vsyncpa [#allocation6], 1 }

</bundles_post_ra>
